<compile_context>
chip_gen: v6e
topology: v6e:2x2x1
jax: 0.10.0
libtpu: 0.0.40
codegen_flags: <defaults>
</compile_context>

<pallas_src>
import jax
import jax.numpy as jnp
from jax import lax
from jax.experimental import pallas as pl
from jax.experimental.pallas import tpu as pltpu


# --------------------------------------------------------------------------
# Kernels
# --------------------------------------------------------------------------
def _linear_kernel_fp32_out(x_ref, w_ref, b_ref, o_ref):
    """Accumulate directly into the fp32 output block (resident across K)."""
    k = pl.program_id(2)

    @pl.when(k == 0)
    def _():
        # Initialise the output tile with the (broadcast) bias.
        o_ref[...] = jnp.broadcast_to(
            b_ref[...].astype(jnp.float32), o_ref.shape
        )

    # Contract x's K dim against the weight's K dim (PyTorch (out, in) layout,
    # no transpose materialized anywhere).
    o_ref[...] += lax.dot_general(
        x_ref[...],
        w_ref[...],
        dimension_numbers=(((1,), (1,)), ((), ())),
        preferred_element_type=jnp.float32,
    )


def _linear_kernel_scratch(x_ref, w_ref, b_ref, o_ref, acc_ref):
    """Variant with fp32 scratch accumulator for sub-fp32 output dtypes."""
    k = pl.program_id(2)

    @pl.when(k == 0)
    def _():
        acc_ref[...] = jnp.broadcast_to(
            b_ref[...].astype(jnp.float32), acc_ref.shape
        )

    acc_ref[...] += lax.dot_general(
        x_ref[...],
        w_ref[...],
        dimension_numbers=(((1,), (1,)), ((), ())),
        preferred_element_type=jnp.float32,
    )

    @pl.when(k == pl.num_programs(2) - 1)
    def _():
        o_ref[...] = acc_ref[...].astype(o_ref.dtype)


# --------------------------------------------------------------------------
# Wrapper / tiling policy
# --------------------------------------------------------------------------
def _round_up(x, m):
    return (x + m - 1) // m * m


def _choose_tile(dim, target, unit):
    """`dim` is a positive multiple of `unit`.  Return a tile size that is a
    multiple of `unit`, divides `dim` exactly (no tile-sized padding), and is
    as close to `target` as practical."""
    if dim <= target:
        return dim
    cap = min(dim, 2 * target)
    divisors = [d for d in range(unit, cap + 1, unit) if dim % d == 0]
    le = [d for d in divisors if d <= target]
    gt = [d for d in divisors if d > target]
    best = max(le) if le else unit
    if gt and best < target // 2:
        # Only tiny divisors below the target -> accept a slightly bigger tile.
        best = min(gt)
    return best


def lr_forward(x, weight, bias, *, tm_target=512, tn_target=512, tk_target=512,
               use_bf16=False):
    """y = x @ weight.T + bias   (PyTorch nn.Linear semantics).

    x:      (batch, in_size)
    weight: (out_size, in_size)   (PyTorch layout, NOT transposed)
    bias:   (out_size,)
    """
    batch, in_size = x.shape
    out_size, w_in = weight.shape
    assert w_in == in_size

    out_dtype = x.dtype
    in_dtype = jnp.bfloat16 if use_bf16 else x.dtype

    # ---- hardware-alignment padding only (M->8, N/K->128) -----------------
    Mp = _round_up(batch, 8)
    Np = _round_up(out_size, 128)
    Kp = _round_up(in_size, 128)

    # ---- tile selection: divisors of the aligned dims, near the targets ---
    tm = _choose_tile(Mp, tm_target, 8)
    tn = _choose_tile(Np, tn_target, 128)
    tk = _choose_tile(Kp, tk_target, 128)

    # Give both TensorCores (v7x) work when the parallel grid would be 1 block.
    if (Mp // tm) * (Np // tn) < 2:
        if tn >= 256 and tn % 256 == 0:
            tn //= 2
        elif tm >= 16 and tm % 16 == 0:
            tm //= 2

    grid = (Mp // tm, Np // tn, Kp // tk)

    # ---- pad/cast inputs (only when needed; K tail MUST be zero) ----------
    xc = x.astype(in_dtype)
    wc = weight.astype(in_dtype)
    if (Mp, Kp) != (batch, in_size):
        xp = jnp.zeros((Mp, Kp), in_dtype).at[:batch, :in_size].set(xc)
    else:
        xp = xc
    if (Np, Kp) != (out_size, in_size):
        wp = jnp.zeros((Np, Kp), in_dtype).at[:out_size, :in_size].set(wc)
    else:
        wp = wc
    if Np != out_size:
        bp = jnp.zeros((Np,), bias.dtype).at[:out_size].set(bias)
    else:
        bp = bias
    bp = bp.reshape(1, Np)

    # ---- block specs -------------------------------------------------------
    total_steps = grid[0] * grid[1] * grid[2]
    weight_multibuf = (tm <= 64) and (total_steps >= 3)  # GEMV-like: weight-BW bound
    if weight_multibuf:
        w_spec = pl.BlockSpec((tn, tk), lambda i, j, k: (j, k),
                              pipeline_mode=pl.Buffered(3))
    else:
        w_spec = pl.BlockSpec((tn, tk), lambda i, j, k: (j, k))

    use_direct = (jnp.dtype(out_dtype) == jnp.dtype(jnp.float32))
    if use_direct:
        kernel = _linear_kernel_fp32_out
        scratch_shapes = ()
    else:
        kernel = _linear_kernel_scratch
        scratch_shapes = (pltpu.VMEM((tm, tn), jnp.float32),)

    # ---- VMEM budget / cost estimate ---------------------------------------
    in_item = jnp.dtype(in_dtype).itemsize
    out_item = jnp.dtype(out_dtype).itemsize
    w_bufs = 3 if weight_multibuf else 2
    vmem_needed = (2 * tm * tk * in_item          # x double buffer
                   + w_bufs * tk * tn * in_item   # weight buffers
                   + 2 * tm * tn * out_item       # output double buffer
                   + 2 * tn * 4)                  # bias
    if not use_direct:
        vmem_needed += tm * tn * 4
    vmem_limit = int(min(max(2 * vmem_needed, 32 << 20), 56 << 20))

    cost = pl.CostEstimate(
        flops=2 * Mp * Np * Kp,
        transcendentals=0,
        bytes_accessed=(Mp * Kp + Np * Kp) * in_item + Mp * Np * out_item,
    )

    out = pl.pallas_call(
        kernel,
        out_shape=jax.ShapeDtypeStruct((Mp, Np), out_dtype),
        grid_spec=pltpu.PrefetchScalarGridSpec(
            num_scalar_prefetch=0,
            grid=grid,
            in_specs=[
                pl.BlockSpec((tm, tk), lambda i, j, k: (i, k)),   # x tile
                w_spec,                                           # weight tile
                pl.BlockSpec((1, tn), lambda i, j, k: (0, j)),    # bias tile
            ],
            out_specs=pl.BlockSpec((tm, tn), lambda i, j, k: (i, j)),
            scratch_shapes=scratch_shapes,
        ),
        compiler_params=pltpu.CompilerParams(
            dimension_semantics=("parallel", "parallel", "arbitrary"),
            vmem_limit_bytes=vmem_limit,
        ),
        cost_estimate=cost,
    )(xp, wp, bp)

    if (Mp, Np) != (batch, out_size):
        out = out[:batch, :out_size]
    return out


# --------------------------------------------------------------------------
# Self-test
# --------------------------------------------------------------------------
if __name__ == "__main__":
    keys = jax.random.split(jax.random.PRNGKey(0), 6)

    def check(batch, in_size, out_size, kx, kw, kb):
        # Deterministic params mimicking nn.Linear's U(-1/sqrt(in), 1/sqrt(in))
        bound = 1.0 / (in_size ** 0.5)
        weight = jax.random.uniform(kw, (out_size, in_size), jnp.float32, -bound, bound)
        bias = jax.random.uniform(kb, (out_size,), jnp.float32, -bound, bound)
        x = jax.random.normal(kx, (batch, in_size), jnp.float32)

        y = lr_forward(x, weight, bias)
        jax.block_until_ready(y)

        y_ref = x @ weight.T + bias
        assert y.shape == (batch, out_size)
        assert jnp.allclose(y, y_ref, atol=1e-5, rtol=1e-5), (
            float(jnp.max(jnp.abs(y - y_ref)))
        )

    # Small aligned-ish shape consistent with LR(in_size, out_size).
    check(8, 32, 16, keys[0], keys[1], keys[2])
    # Small unaligned shape to exercise the alignment-only padding path.
    check(10, 40, 24, keys[3], keys[4], keys[5])

    print("KERNEL_OK")
</pallas_src>

<mosaic_0001>
module attributes {stable_mosaic.version = 11 : i64} {
  func.func @_linear_kernel_fp32_out(%arg0: i32, %arg1: i32, %arg2: i32, %arg3: memref<8x128xf32, #tpu.memory_space<vmem>>, %arg4: memref<128x128xf32, #tpu.memory_space<vmem>>, %arg5: memref<1x128xf32, #tpu.memory_space<vmem>>, %arg6: memref<8x128xf32, #tpu.memory_space<vmem>>) attributes {dimension_semantics = [#tpu.dimension_semantics<parallel>, #tpu.dimension_semantics<parallel>, #tpu.dimension_semantics<arbitrary>], iteration_bounds = array<i64: 1, 1, 1>, scalar_prefetch = 0 : i64, scratch_operands = 0 : i64, tpu.core_type = #tpu.core_type<tc>, window_params = [{transform_indices = @transform_0, window_bounds = array<i64: 8, 128>}, {transform_indices = @transform_1, window_bounds = array<i64: 128, 128>}, {transform_indices = @transform_2, window_bounds = array<i64: 1, 128>}, {transform_indices = @transform_3, window_bounds = array<i64: 8, 128>}]} {
    %c0_i32 = arith.constant 0 : i32
    %0 = arith.cmpi eq, %arg2, %c0_i32 : i32
    %1 = arith.extui %0 : i1 to i32
    %c0_i32_0 = arith.constant 0 : i32
    %2 = arith.cmpi ne, %1, %c0_i32_0 : i32
    scf.if %2 {
      %c0_8 = arith.constant 0 : index
      %c0_9 = arith.constant 0 : index
      %9 = vector.load %arg5[%c0_8, %c0_9] : memref<1x128xf32, #tpu.memory_space<vmem>>, vector<1x128xf32>
      %10 = vector.shape_cast %9 : vector<1x128xf32> to vector<1x128xf32>
      %11 = vector.broadcast %10 : vector<1x128xf32> to vector<8x128xf32>
      %c0_10 = arith.constant 0 : index
      %c0_11 = arith.constant 0 : index
      %12 = vector.load %arg6[%c0_10, %c0_11] : memref<8x128xf32, #tpu.memory_space<vmem>>, vector<8x128xf32>
      tpu.vector_store %arg6[%c0_10, %c0_11], %11 {strides = array<i32>} : memref<8x128xf32, #tpu.memory_space<vmem>>, vector<8x128xf32>,
    } else {
    }
    %c0 = arith.constant 0 : index
    %c0_1 = arith.constant 0 : index
    %3 = vector.load %arg6[%c0, %c0_1] : memref<8x128xf32, #tpu.memory_space<vmem>>, vector<8x128xf32>
    %c0_2 = arith.constant 0 : index
    %c0_3 = arith.constant 0 : index
    %4 = vector.load %arg3[%c0_2, %c0_3] : memref<8x128xf32, #tpu.memory_space<vmem>>, vector<8x128xf32>
    %c0_4 = arith.constant 0 : index
    %c0_5 = arith.constant 0 : index
    %5 = vector.load %arg4[%c0_4, %c0_5] : memref<128x128xf32, #tpu.memory_space<vmem>>, vector<128x128xf32>
    %cst = arith.constant dense<0.000000e+00> : vector<8x128xf32>
    %6 = tpu.matmul %4, %5, %cst {dimension_numbers = #tpu.dot_dimension_numbers<[1], [1], [0], [0], [0, 0, 1, 0], [], []>} : vector<8x128xf32>, vector<128x128xf32>, vector<8x128xf32> -> vector<8x128xf32>
    %7 = arith.addf %3, %6 : vector<8x128xf32>
    %c0_6 = arith.constant 0 : index
    %c0_7 = arith.constant 0 : index
    %8 = vector.load %arg6[%c0_6, %c0_7] : memref<8x128xf32, #tpu.memory_space<vmem>>, vector<8x128xf32>
    tpu.vector_store %arg6[%c0_6, %c0_7], %7 {strides = array<i32>} : memref<8x128xf32, #tpu.memory_space<vmem>>, vector<8x128xf32>,
    return
  }
  func.func @transform_0(%arg0: i32, %arg1: i32, %arg2: i32) -> (i32, i32) {
    %c0_i32 = arith.constant 0 : i32
    return %arg0, %arg2 : i32, i32
  }
  func.func @transform_1(%arg0: i32, %arg1: i32, %arg2: i32) -> (i32, i32) {
    %c0_i32 = arith.constant 0 : i32
    return %arg1, %arg2 : i32, i32
  }
  func.func @transform_2(%arg0: i32, %arg1: i32, %arg2: i32) -> (i32, i32) {
    %c0_i32 = arith.constant 0 : i32
    %c0_i32_0 = arith.constant 0 : i32
    return %c0_i32, %arg1 : i32, i32
  }
  func.func @transform_3(%arg0: i32, %arg1: i32, %arg2: i32) -> (i32, i32) {
    %c0_i32 = arith.constant 0 : i32
    return %arg0, %arg1 : i32, i32
  }
}

</mosaic_0001>

<bundles_post_ra>
// kernel: tpu_custom_call.1
= control target key start
LH: loop header
LB: loop body
LE: loop exit
PB: predicated region body
PF: predicated region fallthrough
CT: control target
= control target key end

     0   :  { %8 = vsyncpa [#allocation3], 0  ;;  %s324_s0 = inlined_call_operand.hbm [shape: f32[8,128], index: 0, kind: input, shape index: {}]   ;;  %s325_s1 = inlined_call_operand.hbm [shape: f32[128,128], index: 1, kind: input, shape index: {}]   ;;  %s326_s2 = inlined_call_operand.vmem [shape: f32[1,128], index: 2, kind: input, shape index: {}]   ;;  %s327_s3 = inlined_call_operand.hbm [shape: f32[8,128], index: 3, kind: output, shape index: {}]  }
   0x1   :  { %9 = vsyncpa [#allocation6], 0 }
   0x2   :  { %10 = vsyncpa [#allocation4], 0  ;;  %s285_s12 = smov [#allocation2]   ;;  %s286_s14 = smov [#allocation5]  }
   0x3   :  { %s17_s13 = sshll.u32 %s285_s12, 4  ;;  %s26_s15 = sshll.u32 %s286_s14, 4  ;;  %s18_s13 = int_to_ptr.vmem [resolvable:$true] %s17_s13  ;;  %s27_s15 = int_to_ptr.vmem [resolvable:$true] %s26_s15 }
   0x4   :  { %s227_s16 = scalar_lea.vmem %s18_s13, 128  ;;  %p232_p1 = scmp.lt.s32.totalorder %s18_s13, %s18_s13 }
   0x5   :  { %p228_p0 = scmp.ne.s32.totalorder %s18_s13, %s227_s16  ;;  %p233_p2 = scmp.lt.s32.totalorder %s227_s16, %s227_s16 }
   0x7   :  { %p234_p3 = por %p233_p2, %p232_p1 }
   0x9   :  { %p235_p4 = pnand %p234_p3, %p228_p0 }
   0xb   :  { %238 = shalt.err (!%p235_p4)
}
   0xc   :  { %20 = dma.hbm_to_vmem [thread:$0]  %s324_s0, 128, %s18_s13, [#allocation3]  }
   0xd   :  { %s247_s19 = scalar_lea.vmem %s27_s15, 2048  ;;  %p252_p6 = scmp.lt.s32.totalorder %s27_s15, %s27_s15 }
   0xe   :  { %p248_p5 = scmp.ne.s32.totalorder %s27_s15, %s247_s19  ;;  %p253_p7 = scmp.lt.s32.totalorder %s247_s19, %s247_s19 }
  0x10   :  { %p254_p8 = por %p253_p7, %p252_p6 }
  0x12   :  { %p255_p9 = pnand %p254_p8, %p248_p5 }
  0x14   :  { %258 = shalt.err (!%p255_p9)
}
  0x15   :  { %s287_s20 = smov 128   ;;  %s288_s21 = smov 8  }
  0x16   :  { %32 = dma.hbm_to_vmem [thread:$0]  %s325_s1, 2048, %s27_s15, [#allocation6], %s287_s20, %s287_s20, %s288_s21  }
  0x17   :  { %279 = dma.done.wait [#allocation3], 128  }
  0x18   :  { %280 = vsyncadd [#allocation3], 4294967168 }
  0x19   :  { %281 = dma.done.wait [#allocation6], 2048  }
  0x1a   :  { %282 = vsyncadd [#allocation6], 4294965248  ;;  %v289_v0 = vmov 0.0   ;;  %vm290_vm0 = vmmov 0   ;;  %v70_v1 = vld [vmem:[#allocation5 + $0x78] sm:$0xff]  ;;  %v69_v2 = vld [vmem:[#allocation5 + $0x70] sm:$0xff] }
  0x1b   :  { %177 = vmatprep.subr.mxu0 %v289_v0  ;;  %209 = vmatprep.mubr.msk.f32.mxu0 %vm290_vm0, %v289_v0  ;;  %v68_v3 = vld [vmem:[#allocation5 + $0x68] sm:$0xff]  ;;  %v67_v4 = vld [vmem:[#allocation5 + $0x60] sm:$0xff]  ;;  %v66_v5 = vld [vmem:[#allocation5 + $0x58] sm:$0xff]  ;;  %s291_s24 = smov [#allocation7]  }
  0x1c   :  { %178 = vmatpush3.xpose.msra.mxu0 %v70_v1  ;;  %v65_v6 = vld [vmem:[#allocation5 + $0x50] sm:$0xff]  ;;  %v64_v7 = vld [vmem:[#allocation5 + $0x48] sm:$0xff]  ;;  %v63_v8 = vld [vmem:[#allocation5 + $0x40] sm:$0xff]  ;;  %s149_s25 = sshll.u32 %s291_s24, 4  ;;  %s150_s25 = int_to_ptr.vmem [resolvable:$true] %s149_s25 }
  0x1d   :  { %179 = vmatprep.subr.mxu0 %v289_v0  ;;  %v62_v9 = vld [vmem:[#allocation5 + $0x38] sm:$0xff]  ;;  %v61_v10 = vld [vmem:[#allocation5 + $0x30] sm:$0xff]  ;;  %v60_v11 = vld [vmem:[#allocation5 + $0x28] sm:$0xff]  ;;  %s259_s26 = scalar_lea.vmem %s150_s25, 128  ;;  %p264_p11 = scmp.lt.s32.totalorder %s150_s25, %s150_s25 }
  0x1e   :  { %v59_v12 = vld [vmem:[#allocation5 + $0x20] sm:$0xff]  ;;  %v58_v13 = vld [vmem:[#allocation5 + $0x18] sm:$0xff]  ;;  %v57_v14 = vld [vmem:[#allocation5 + $0x10] sm:$0xff]  ;;  %p260_p10 = scmp.ne.s32.totalorder %s150_s25, %s259_s26  ;;  %p265_p12 = scmp.lt.s32.totalorder %s259_s26, %s259_s26 }
  0x1f   :  { %v56_v15 = vld [vmem:[#allocation5 + $0x8] sm:$0xff]  ;;  %v55_v16 = vld [vmem:[#allocation5] sm:$0xff]  ;;  %v54_v17 = vld [vmem:[#allocation2] sm:$0xff] }
  0x20   :  { %180 = vmatpush3.xpose.msra.mxu0 %v69_v2  ;;  %v159_v18 = vld [vmem:[%s326_s2] ss:$0 sm:$0xff]  ;;  %p266_p13 = por %p265_p12, %p264_p11 }
  0x21   :  { %181 = vmatprep.subr.mxu0 %v289_v0 }
  0x22   :  { %p267_p0 = pnand %p266_p13, %p260_p10 }
  0x24   :  { %182 = vmatpush3.xpose.msra.mxu0 %v68_v3 }
  0x25   :  { %183 = vmatprep.subr.mxu0 %v289_v0 }
  0x28   :  { %184 = vmatpush3.xpose.msra.mxu0 %v67_v4 }
  0x29   :  { %185 = vmatprep.subr.mxu0 %v289_v0 }
  0x2c   :  { %186 = vmatpush3.xpose.msra.mxu0 %v66_v5 }
  0x2d   :  { %187 = vmatprep.subr.mxu0 %v289_v0 }
  0x30   :  { %188 = vmatpush3.xpose.msra.mxu0 %v65_v6 }
  0x31   :  { %189 = vmatprep.subr.mxu0 %v289_v0 }
  0x34   :  { %190 = vmatpush3.xpose.msra.mxu0 %v64_v7 }
  0x35   :  { %191 = vmatprep.subr.mxu0 %v289_v0 }
  0x38   :  { %192 = vmatpush3.xpose.msra.mxu0 %v63_v8 }
  0x39   :  { %193 = vmatprep.subr.mxu0 %v289_v0 }
  0x3c   :  { %194 = vmatpush3.xpose.msra.mxu0 %v62_v9 }
  0x3d   :  { %195 = vmatprep.subr.mxu0 %v289_v0 }
  0x40   :  { %196 = vmatpush3.xpose.msra.mxu0 %v61_v10 }
  0x41   :  { %197 = vmatprep.subr.mxu0 %v289_v0 }
  0x44   :  { %198 = vmatpush3.xpose.msra.mxu0 %v60_v11 }
  0x45   :  { %199 = vmatprep.subr.mxu0 %v289_v0 }
  0x48   :  { %200 = vmatpush3.xpose.msra.mxu0 %v59_v12 }
  0x49   :  { %201 = vmatprep.subr.mxu0 %v289_v0 }
  0x4c   :  { %202 = vmatpush3.xpose.msra.mxu0 %v58_v13 }
  0x4d   :  { %203 = vmatprep.subr.mxu0 %v289_v0 }
  0x50   :  { %204 = vmatpush3.xpose.msra.mxu0 %v57_v14 }
  0x51   :  { %205 = vmatprep.subr.mxu0 %v289_v0 }
  0x54   :  { %206 = vmatpush3.xpose.msra.mxu0 %v56_v15 }
  0x55   :  { %207 = vmatprep.subr.mxu0 %v289_v0 }
  0x58   :  { %208 = vmatpush3.xpose.msra.mxu0 %v55_v16 }
  0x5b   :  { %210 = vmatmul.mubr.f32.vlgmr.msra.gmra.mxu0 %v54_v17 }
 0x11b   :  { %v137_v19 = vpop.f32.mrf.mxu0 }
 0x11c   :  { %v141_v20 = vadd.f32 %v159_v18, %v137_v19 }
 0x11d   :  { %v211_v21 = vpop.f32.mrf.mxu0 }
 0x11e   :  { %142 = vst [vmem:[#allocation7] sm:$0xff] %v141_v20 }
 0x11f   :  { %270 = shalt.err (!%p267_p0)
}
 0x120   :  { %152 = dma.vmem_to_hbm [thread:$0]  %s150_s25, 128, %s327_s3, [#allocation4]  }
 0x121   :  { %283 = dma.done.wait [#allocation4], 128  }
 0x122   :  { %284 = vsyncadd [#allocation4], 4294967168 }
 0x123   :  { %156 = vsyncpa [#allocation3], 1 }
 0x124   :  { %157 = vsyncpa [#allocation6], 1 }
 0x125   :  { %158 = vsyncpa [#allocation4], 1 }

</bundles_post_ra>
